<compile_context>
chip_gen: v7x
topology: tpu7x:2x2x1
jax: 0.10.0
libtpu: 0.0.40
codegen_flags: <defaults>
</compile_context>

<pallas_src>
import functools

import jax
import jax.numpy as jnp
from jax.experimental import pallas as pl
from jax.experimental.pallas import tpu as pltpu

_HALO = 128  # lane-aligned halo width for the time-tiled path (needs max_k <= 128)


def _delta_term(d, idx, *, axis, k):
    """|d[i+k] - d[i]| + (d[i+k] - d[i])^2 along `axis`, keeping block shape.

    rolled[i] = d[(i + k) % size]; the wrap lanes are exactly idx >= size - k,
    so one compare on the hoisted iota reproduces z[..., k:] - z[..., :-k]
    (and yields all-zero when k >= size, like the reference's empty slice).
    """
    size = d.shape[axis]
    shift = (size - k) % size                     # static, non-negative
    rolled = pltpu.roll(d, shift, axis=axis)
    e = rolled - d
    mask = idx < (size - k)
    return jnp.where(mask, jnp.abs(e) + e * e, 0.0)


def _accumulate_block(d, *, max_k):
    """All loss terms that stay inside one (b_tile, freq, t_tile) block."""
    acc = jnp.abs(d) + d * d                                       # ls term
    f_idx = jax.lax.broadcasted_iota(jnp.int32, d.shape, 1)
    acc = acc + _delta_term(d, f_idx, axis=1, k=1)                 # lf term (k = 1)
    t_idx = jax.lax.broadcasted_iota(jnp.int32, d.shape, 2)
    for k in range(1, max_k + 1):                                  # lt terms
        acc = acc + _delta_term(d, t_idx, axis=2, k=k)
    return acc


def _loss_kernel(x_ref, xhat_ref, out_ref, *, max_k):
    """Untiled time axis: one (b_tile, freq, time) slab per grid step."""
    d = x_ref[...].astype(jnp.float32) - xhat_ref[...].astype(jnp.float32)
    acc = _accumulate_block(d, max_k=max_k)
    out_ref[...] = jnp.sum(acc, axis=1, keepdims=True)             # sublane reduce only


def _loss_kernel_tiled(x_ref, xhat_ref, xhalo_ref, xhathalo_ref, out_ref, *, max_k):
    """Time-tiled path with a 128-column left-halo input for cross-tile deltas."""
    d = x_ref[...].astype(jnp.float32) - xhat_ref[...].astype(jnp.float32)
    acc = _accumulate_block(d, max_k=max_k)

    # Cross-boundary time deltas: right element in this tile's first k lanes,
    # left element in the previous tile's trailing k columns (inside the halo).
    h = xhalo_ref[...].astype(jnp.float32) - xhathalo_ref[...].astype(jnp.float32)
    d_head = d[:, :, :_HALO]
    lane = jax.lax.broadcasted_iota(jnp.int32, h.shape, 2)
    interior = pl.program_id(1) > 0        # first tile: halo is clamped -> mask off
    acc_x = jnp.zeros_like(h)
    for k in range(1, max_k + 1):
        e = d_head - pltpu.roll(h, k, axis=2)          # e[r] = d[r] - h[HALO - k + r]
        mask = jnp.logical_and(lane < k, interior)
        acc_x = acc_x + jnp.where(mask, jnp.abs(e) + e * e, 0.0)

    out_ref[...] = jnp.sum(acc, axis=1, keepdims=True)
    out_ref[:, :, :_HALO] = out_ref[:, :, :_HALO] + jnp.sum(acc_x, axis=1, keepdims=True)


def _divisors_desc(n):
    return [d for d in range(n, 0, -1) if n % d == 0]


def speech_continuation_loss(x_c, x_c_hat, *, max_k, t_tile=None, b_tile=None):
    """Pallas TPU implementation of SpeechContinuationLoss.forward.

    Args:
      x_c, x_c_hat: (batch, freq, time) arrays (f32 or bf16; bf16 inputs are
        upcast in-kernel, halving HBM traffic), same shape.
      max_k: maximum order of the time-axis delta loss (static).
      t_tile / b_tile: optional explicit tile sizes (auto-chosen otherwise).

    Returns:
      float32 scalar total loss.
    """
    assert x_c.shape == x_c_hat.shape, (x_c.shape, x_c_hat.shape)
    batch, freq, time = x_c.shape
    itemsize = x_c.dtype.itemsize

    # Generation-aware VMEM budget: v5e/v6e have 128 MiB physical, v7x only 64 MiB.
    try:
        vmem_cap = int(pltpu.get_tpu_info().vmem_capacity_bytes)
    except Exception:
        vmem_cap = 64 << 20                      # assume smallest part if unknown
    budget = max(min(vmem_cap - (16 << 20), 100 << 20), 24 << 20)

    def step_vmem_bytes(bt, tt, tiled):
        blocks = 2 * 2 * bt * freq * tt * itemsize           # 2 inputs x double buffer
        if tiled:
            blocks += 2 * 2 * bt * freq * _HALO * itemsize   # halo inputs
        work = 8 * bt * freq * tt * 4                        # f32 d/rolls/iotas/acc
        out = 2 * bt * tt * 4
        return blocks + work + out + (2 << 20)

    # ---- time tile: full slab unless it would overflow the VMEM budget ----
    if t_tile is None:
        t_tile = time
        if (step_vmem_bytes(1, time, False) > budget
                and time % _HALO == 0 and max_k <= _HALO):
            n128 = time // _HALO
            cands = sorted([m * _HALO for m in range(1, n128 + 1) if n128 % m == 0],
                           reverse=True)
            for tt in cands:
                if tt < time and step_vmem_bytes(1, tt, True) <= budget:
                    t_tile = tt
                    break
        # TODO(synk): ragged time axes (time % 128 != 0) that do not fit VMEM
        # still fall back to the full slab; add a BoundedSlice tail tile.
    elif t_tile != time:
        assert (time % t_tile == 0 and t_tile % _HALO == 0 and max_k <= _HALO), (
            "explicit t_tile must divide time, be a multiple of 128, and max_k <= 128")

    tiled = t_tile != time

    # ---- fold batch elements per step when the per-element slab is small ----
    if b_tile is None:
        b_tile = 1
        per_elem = freq * t_tile * itemsize
        for cand in _divisors_desc(batch):
            if (cand * per_elem <= (2 << 20)
                    and step_vmem_bytes(cand, t_tile, tiled) <= budget):
                b_tile = cand
                break
    else:
        assert batch % b_tile == 0

    n_b = batch // b_tile
    n_t = time // t_tile

    vmem_limit = int(min(max(step_vmem_bytes(b_tile, t_tile, tiled), 32 << 20), budget))

    n_elem = batch * freq * time
    halo_bytes = (2 * batch * freq * _HALO * itemsize * n_t) if tiled else 0
    cost = pl.CostEstimate(
        flops=int((7 * (max_k + 1) + 4) * n_elem),
        transcendentals=0,
        bytes_accessed=int(2 * n_elem * itemsize + halo_bytes + batch * time * 4),
    )

    out_shape = jax.ShapeDtypeStruct((batch, 1, time), jnp.float32)

    if not tiled:
        partials = pl.pallas_call(
            functools.partial(_loss_kernel, max_k=max_k),
            out_shape=out_shape,
            grid=(n_b,),
            in_specs=[
                pl.BlockSpec((b_tile, freq, time), lambda b: (b, 0, 0)),
                pl.BlockSpec((b_tile, freq, time), lambda b: (b, 0, 0)),
            ],
            out_specs=pl.BlockSpec((b_tile, 1, time), lambda b: (b, 0, 0)),
            compiler_params=pltpu.CompilerParams(
                dimension_semantics=("parallel",),
                vmem_limit_bytes=vmem_limit,
            ),
            cost_estimate=cost,
        )(x_c, x_c_hat)
    else:
        halo_stride = t_tile // _HALO

        def main_map(b, t):
            return (b, 0, t)

        def halo_map(b, t):
            # 128-column block immediately left of this tile; clamped at t == 0
            # (the clamped read is masked off inside the kernel).
            return (b, 0, jnp.maximum(t * halo_stride - 1, 0))

        partials = pl.pallas_call(
            functools.partial(_loss_kernel_tiled, max_k=max_k),
            out_shape=out_shape,
            grid=(n_b, n_t),
            in_specs=[
                pl.BlockSpec((b_tile, freq, t_tile), main_map),
                pl.BlockSpec((b_tile, freq, t_tile), main_map),
                pl.BlockSpec((b_tile, freq, _HALO), halo_map),
                pl.BlockSpec((b_tile, freq, _HALO), halo_map),
            ],
            out_specs=pl.BlockSpec((b_tile, 1, t_tile), lambda b, t: (b, 0, t)),
            compiler_params=pltpu.CompilerParams(
                dimension_semantics=("parallel", "parallel"),
                vmem_limit_bytes=vmem_limit,
            ),
            cost_estimate=cost,
        )(x_c, x_c_hat, x_c, x_c_hat)

    # Tiny lane-dense (batch, 1, time) partials; final reduction in plain XLA.
    return jnp.sum(partials)


def _reference_loss(x_c, x_c_hat, *, max_k):
    """Pure-JAX reference mirroring the PyTorch module."""
    x_c = x_c.astype(jnp.float32)
    x_c_hat = x_c_hat.astype(jnp.float32)

    def l1_l2(a, b):
        return jnp.sum(jnp.abs(a - b)) + jnp.sum((a - b) ** 2)

    total = l1_l2(x_c, x_c_hat)
    total = total + l1_l2(x_c[:, 1:, :] - x_c[:, :-1, :],
                          x_c_hat[:, 1:, :] - x_c_hat[:, :-1, :])
    for k in range(1, max_k + 1):
        total = total + l1_l2(x_c[:, :, k:] - x_c[:, :, :-k],
                              x_c_hat[:, :, k:] - x_c_hat[:, :, :-k])
    return total


if __name__ == "__main__":
    MAX_K = 3
    key = jax.random.PRNGKey(0)
    k1, k2, k3, k4 = jax.random.split(key, 4)

    # Case 1: small slab -> untiled path, batch folding (b_tile = batch).
    x1 = jax.random.normal(k1, (2, 16, 128), dtype=jnp.float32)
    y1 = jax.random.normal(k2, (2, 16, 128), dtype=jnp.float32)
    out1 = jax.block_until_ready(speech_continuation_loss(x1, y1, max_k=MAX_K))
    ref1 = _reference_loss(x1, y1, max_k=MAX_K)
    assert jnp.allclose(out1, ref1, rtol=1e-4, atol=1e-2), (out1, ref1)

    # Case 2: force the time-tiled (halo) path to exercise cross-tile deltas.
    x2 = jax.random.normal(k3, (2, 16, 384), dtype=jnp.float32)
    y2 = jax.random.normal(k4, (2, 16, 384), dtype=jnp.float32)
    out2 = jax.block_until_ready(
        speech_continuation_loss(x2, y2, max_k=MAX_K, t_tile=128))
    ref2 = _reference_loss(x2, y2, max_k=MAX_K)
    assert jnp.allclose(out2, ref2, rtol=1e-4, atol=1e-2), (out2, ref2)

    print("KERNEL_OK")
</pallas_src>

<mosaic_0001>
module attributes {stable_mosaic.version = 11 : i64} {
  func.func @_loss_kernel(%arg0: i32, %arg1: memref<2x16x128xf32, #tpu.memory_space<vmem>>, %arg2: memref<2x16x128xf32, #tpu.memory_space<vmem>>, %arg3: memref<2x1x128xf32, #tpu.memory_space<vmem>>) attributes {dimension_semantics = [#tpu.dimension_semantics<parallel>], iteration_bounds = array<i64: 1>, scalar_prefetch = 0 : i64, scratch_operands = 0 : i64, tpu.core_type = #tpu.core_type<tc>, window_params = [{transform_indices = @transform_0, window_bounds = array<i64: 2, 16, 128>}, {transform_indices = @transform_1, window_bounds = array<i64: 2, 16, 128>}, {transform_indices = @transform_2, window_bounds = array<i64: 2, 1, 128>}]} {
    %c0 = arith.constant 0 : index
    %c0_0 = arith.constant 0 : index
    %c0_1 = arith.constant 0 : index
    %0 = vector.load %arg1[%c0, %c0_0, %c0_1] : memref<2x16x128xf32, #tpu.memory_space<vmem>>, vector<2x16x128xf32>
    %c0_2 = arith.constant 0 : index
    %c0_3 = arith.constant 0 : index
    %c0_4 = arith.constant 0 : index
    %1 = vector.load %arg2[%c0_2, %c0_3, %c0_4] : memref<2x16x128xf32, #tpu.memory_space<vmem>>, vector<2x16x128xf32>
    %2 = arith.subf %0, %1 : vector<2x16x128xf32>
    %3 = math.absf %2 : vector<2x16x128xf32>
    %4 = arith.mulf %2, %2 : vector<2x16x128xf32>
    %5 = arith.addf %3, %4 : vector<2x16x128xf32>
    %6 = tpu.iota {dimensions = array<i32: 1>} : vector<2x16x128xi32>
    %c15_i32 = arith.constant 15 : i32
    %7 = tpu.dynamic_rotate %2 by %c15_i32 dim 1 : vector<2x16x128xf32>, i32 -> vector<2x16x128xf32>
    %8 = arith.subf %7, %2 : vector<2x16x128xf32>
    %c15_i32_5 = arith.constant 15 : i32
    %9 = vector.broadcast %c15_i32_5 : i32 to vector<2x16x128xi32>
    %10 = arith.cmpi slt, %6, %9 : vector<2x16x128xi32>
    %11 = math.absf %8 : vector<2x16x128xf32>
    %12 = arith.mulf %8, %8 : vector<2x16x128xf32>
    %13 = arith.addf %11, %12 : vector<2x16x128xf32>
    %cst = arith.constant 0.000000e+00 : f32
    %14 = vector.broadcast %cst : f32 to vector<2x16x128xf32>
    %15 = arith.select %10, %13, %14 : vector<2x16x128xi1>, vector<2x16x128xf32>
    %16 = arith.addf %5, %15 : vector<2x16x128xf32>
    %17 = tpu.iota {dimensions = array<i32: 2>} : vector<2x16x128xi32>
    %c127_i32 = arith.constant 127 : i32
    %18 = tpu.dynamic_rotate %2 by %c127_i32 dim 2 : vector<2x16x128xf32>, i32 -> vector<2x16x128xf32>
    %19 = arith.subf %18, %2 : vector<2x16x128xf32>
    %c127_i32_6 = arith.constant 127 : i32
    %20 = vector.broadcast %c127_i32_6 : i32 to vector<2x16x128xi32>
    %21 = arith.cmpi slt, %17, %20 : vector<2x16x128xi32>
    %22 = math.absf %19 : vector<2x16x128xf32>
    %23 = arith.mulf %19, %19 : vector<2x16x128xf32>
    %24 = arith.addf %22, %23 : vector<2x16x128xf32>
    %cst_7 = arith.constant 0.000000e+00 : f32
    %25 = vector.broadcast %cst_7 : f32 to vector<2x16x128xf32>
    %26 = arith.select %21, %24, %25 : vector<2x16x128xi1>, vector<2x16x128xf32>
    %27 = arith.addf %16, %26 : vector<2x16x128xf32>
    %c126_i32 = arith.constant 126 : i32
    %28 = tpu.dynamic_rotate %2 by %c126_i32 dim 2 : vector<2x16x128xf32>, i32 -> vector<2x16x128xf32>
    %29 = arith.subf %28, %2 : vector<2x16x128xf32>
    %c126_i32_8 = arith.constant 126 : i32
    %30 = vector.broadcast %c126_i32_8 : i32 to vector<2x16x128xi32>
    %31 = arith.cmpi slt, %17, %30 : vector<2x16x128xi32>
    %32 = math.absf %29 : vector<2x16x128xf32>
    %33 = arith.mulf %29, %29 : vector<2x16x128xf32>
    %34 = arith.addf %32, %33 : vector<2x16x128xf32>
    %cst_9 = arith.constant 0.000000e+00 : f32
    %35 = vector.broadcast %cst_9 : f32 to vector<2x16x128xf32>
    %36 = arith.select %31, %34, %35 : vector<2x16x128xi1>, vector<2x16x128xf32>
    %37 = arith.addf %27, %36 : vector<2x16x128xf32>
    %c125_i32 = arith.constant 125 : i32
    %38 = tpu.dynamic_rotate %2 by %c125_i32 dim 2 : vector<2x16x128xf32>, i32 -> vector<2x16x128xf32>
    %39 = arith.subf %38, %2 : vector<2x16x128xf32>
    %c125_i32_10 = arith.constant 125 : i32
    %40 = vector.broadcast %c125_i32_10 : i32 to vector<2x16x128xi32>
    %41 = arith.cmpi slt, %17, %40 : vector<2x16x128xi32>
    %42 = math.absf %39 : vector<2x16x128xf32>
    %43 = arith.mulf %39, %39 : vector<2x16x128xf32>
    %44 = arith.addf %42, %43 : vector<2x16x128xf32>
    %cst_11 = arith.constant 0.000000e+00 : f32
    %45 = vector.broadcast %cst_11 : f32 to vector<2x16x128xf32>
    %46 = arith.select %41, %44, %45 : vector<2x16x128xi1>, vector<2x16x128xf32>
    %47 = arith.addf %37, %46 : vector<2x16x128xf32>
    %cst_12 = arith.constant dense<0.000000e+00> : vector<2x128xf32>
    %48 = vector.multi_reduction <add>, %47, %cst_12 [1] : vector<2x16x128xf32> to vector<2x128xf32>
    %49 = vector.shape_cast %48 : vector<2x128xf32> to vector<2x1x128xf32>
    %c0_13 = arith.constant 0 : index
    %c0_14 = arith.constant 0 : index
    %c0_15 = arith.constant 0 : index
    %50 = vector.load %arg3[%c0_13, %c0_14, %c0_15] : memref<2x1x128xf32, #tpu.memory_space<vmem>>, vector<2x1x128xf32>
    tpu.vector_store %arg3[%c0_13, %c0_14, %c0_15], %49 {strides = array<i32>} : memref<2x1x128xf32, #tpu.memory_space<vmem>>, vector<2x1x128xf32>,
    return
  }
  func.func @transform_0(%arg0: i32) -> (i32, i32, i32) {
    %c0_i32 = arith.constant 0 : i32
    %c0_i32_0 = arith.constant 0 : i32
    %c0_i32_1 = arith.constant 0 : i32
    return %arg0, %c0_i32, %c0_i32_0 : i32, i32, i32
  }
  func.func @transform_1(%arg0: i32) -> (i32, i32, i32) {
    %c0_i32 = arith.constant 0 : i32
    %c0_i32_0 = arith.constant 0 : i32
    %c0_i32_1 = arith.constant 0 : i32
    return %arg0, %c0_i32, %c0_i32_0 : i32, i32, i32
  }
  func.func @transform_2(%arg0: i32) -> (i32, i32, i32) {
    %c0_i32 = arith.constant 0 : i32
    %c0_i32_0 = arith.constant 0 : i32
    %c0_i32_1 = arith.constant 0 : i32
    return %arg0, %c0_i32, %c0_i32_0 : i32, i32, i32
  }
}

</mosaic_0001>

<bundles_post_ra>
// kernel: tpu_custom_call.1
= control target key start
LH: loop header
LB: loop body
LE: loop exit
PB: predicated region body
PF: predicated region fallthrough
CT: control target
= control target key end

     0   :  { %7 = vsyncpa [#allocation3], 0  ;;  %s463_s0 = inlined_call_operand.hbm [shape: f32[2,16,128], index: 0, kind: input, shape index: {}]   ;;  %s464_s1 = inlined_call_operand.hbm [shape: f32[2,16,128], index: 1, kind: input, shape index: {}]   ;;  %s465_s2 = inlined_call_operand.hbm [shape: f32[2,1,128], index: 2, kind: output, shape index: {}]  }
   0x1   :  { %8 = vsyncpa [#allocation6], 0 }
   0x2   :  { %9 = vsyncpa [#allocation4], 0  ;;  %s319_s9 = smov [#allocation2]   ;;  %s247_s13 = scalar_lea.hbm %s463_s0, 512 }
   0x3   :  { %s15_s10 = sshll.u32 %s319_s9, 4  ;;  %p248_p0 = scmp.ne.s32.totalorder %s463_s0, %s247_s13  ;;  %s16_s10 = int_to_ptr.vmem [resolvable:$true] %s15_s10 }
   0x4   :  { %p251_p1 = scmp.lt.u32.totalorder %s247_s13, %s463_s0 }
   0x6   :  { %p253_p2 = pnand %p251_p1, %p248_p0 }
   0x8   :  { %256 = shalt.err (!%p253_p2)
}
   0x9   :  { %s257_s18 = scalar_lea.vmem %s16_s10, 512  ;;  %p262_p4 = scmp.lt.s32.totalorder %s16_s10, %s16_s10 }
   0xa   :  { %p258_p3 = scmp.ne.s32.totalorder %s16_s10, %s257_s18  ;;  %p263_p5 = scmp.lt.s32.totalorder %s257_s18, %s257_s18 }
   0xc   :  { %p264_p6 = por %p263_p5, %p262_p4 }
   0xe   :  { %p265_p7 = pnand %p264_p6, %p258_p3 }
  0x10   :  { %268 = shalt.err (!%p265_p7)
}
  0x11   :  { %s320_s19 = smov 128   ;;  %s321_s20 = smov 8  }
  0x12   :  { %21 = dma.hbm_to_vmem [thread:$0]  %s463_s0, 512, %s16_s10, [#allocation3], %s320_s19, %s320_s19, %s321_s20  }
  0x13   :  { %s322_s23 = smov [#allocation5]   ;;  %s269_s27 = scalar_lea.hbm %s464_s1, 512 }
  0x14   :  { %s27_s24 = sshll.u32 %s322_s23, 4  ;;  %p270_p8 = scmp.ne.s32.totalorder %s464_s1, %s269_s27  ;;  %s28_s24 = int_to_ptr.vmem [resolvable:$true] %s27_s24 }
  0x15   :  { %p273_p9 = scmp.lt.u32.totalorder %s269_s27, %s464_s1 }
  0x17   :  { %p275_p10 = pnand %p273_p9, %p270_p8 }
  0x19   :  { %278 = shalt.err (!%p275_p10)
}
  0x1a   :  { %s279_s4 = scalar_lea.vmem %s28_s24, 512  ;;  %p284_p12 = scmp.lt.s32.totalorder %s28_s24, %s28_s24 }
  0x1b   :  { %p280_p11 = scmp.ne.s32.totalorder %s28_s24, %s279_s4  ;;  %p285_p13 = scmp.lt.s32.totalorder %s279_s4, %s279_s4 }
  0x1d   :  { %p286_p0 = por %p285_p13, %p284_p12 }
  0x1f   :  { %p287_p1 = pnand %p286_p0, %p280_p11 }
  0x21   :  { %290 = shalt.err (!%p287_p1)
}
  0x22   :  { %33 = dma.hbm_to_vmem [thread:$0]  %s464_s1, 512, %s28_s24, [#allocation6], %s320_s19, %s320_s19, %s321_s20  }
  0x23   :  { %313 = dma.done.wait [#allocation3], 512  }
  0x24   :  { %314 = vsyncadd [#allocation3], 4294966784 }
  0x25   :  { %315 = dma.done.wait [#allocation6], 512  }
  0x26   :  { %316 = vsyncadd [#allocation6], 4294966784  ;;  %v42_v0 = vld [vmem:[#allocation2 + $0x10] sm:$0xff]  ;;  %v40_v2 = vld [vmem:[#allocation2] sm:$0xff]  ;;  %s323_s6 = smov 127   ;;  %s324_s1 = smov 126   ;;  %v64_v12 = vlaneseq }
  0x27   :  { %v46_v1 = vld [vmem:[#allocation5 + $0x10] sm:$0xff]  ;;  %v44_v4 = vld [vmem:[#allocation5] sm:$0xff]  ;;  %v43_v5 = vld [vmem:[#allocation2 + $0x18] sm:$0xff]  ;;  %s325_s7 = smov 125   ;;  %s326_s8 = smov [#allocation7]  }
  0x28   :  { %v368_v3 = vsub.f32 %v42_v0, %v46_v1  ;;  %v47_v6 = vld [vmem:[#allocation5 + $0x18] sm:$0xff]  ;;  %v370_v7 = vsub.f32 %v40_v2, %v44_v4  ;;  %v41_v8 = vld [vmem:[#allocation2 + $0x8] sm:$0xff]  ;;  %v65_v13 = vshrl.u32 %v64_v12, 7  ;;  %v397_v28 = vand.u32 127, %v64_v12  ;;  %s224_s9 = sshll.u32 %s326_s8, 4  ;;  %s225_s9 = int_to_ptr.vmem [resolvable:$true] %s224_s9 }
  0x29   :  { %v45_v9 = vld [vmem:[#allocation5 + $0x8] sm:$0xff]  ;;  %v373_v10 = vsub.f32 %v43_v5, %v47_v6  ;;  %s291_s10 = scalar_lea.vmem %s225_s9, 32  ;;  %p296_p3 = scmp.lt.s32.totalorder %s225_s9, %s225_s9 }
  0x2a   :  { %108 = vrot.lane.b32.xlu1 %v368_v3, %s323_s6  ;;  %104 = vrot.lane.b32.xlu0 %v370_v7, %s323_s6  ;;  %v376_v11 = vsub.f32 %v41_v8, %v45_v9  ;;  %v68_v15 = vrot.slane %v368_v3, 1  ;;  %vm71_vm0 = vcmp.lt.s32.totalorder %v65_v13, 7  ;;  %v67_v17 = vrot.slane %v370_v7, 1  ;;  %p292_p2 = scmp.ne.s32.totalorder %s225_s9, %s291_s10  ;;  %p297_p4 = scmp.lt.s32.totalorder %s291_s10, %s291_s10 }
  0x2b   :  { %v70_v14 = vrot.slane %v373_v10, 1  ;;  %v54_v25 = vand.u32 2147483647, %v368_v3  ;;  %v58_v26 = vmul.f32 %v368_v3, %v368_v3  ;;  %v66_v27 = vadd.s32 8, %v65_v13 }
  0x2c   :  { %v69_v16 = vrot.slane %v376_v11, 1  ;;  %v52_v30 = vand.u32 2147483647, %v370_v7  ;;  %v56_v32 = vmul.f32 %v370_v7, %v370_v7  ;;  %v55_v34 = vand.u32 2147483647, %v373_v10  ;;  %p298_p5 = por %p297_p4, %p296_p3 }
  0x2d   :  { %v73_v18 = vsel %vm71_vm0, %v68_v15, %v70_v14  ;;  %v75_v20 = vsel %vm71_vm0, %v70_v14, %v68_v15  ;;  %v59_v35 = vmul.f32 %v373_v10, %v373_v10  ;;  %v62_v40 = vadd.f32 %v58_v26, %v54_v25 }
  0x2e   :  { %110 = vrot.lane.b32.xlu1 %v373_v10, %s323_s6  ;;  %106 = vrot.lane.b32.xlu0 %v376_v11, %s323_s6  ;;  %v74_v19 = vsel %vm71_vm0, %v69_v16, %v67_v17  ;;  %v78_v21 = vsub.f32 %v73_v18, %v368_v3  ;;  %v72_v22 = vsel %vm71_vm0, %v67_v17, %v69_v16  ;;  %vm81_vm1 = vcmp.lt.s32.totalorder %v66_v27, 15  ;;  %p299_p6 = pnand %p298_p5, %p292_p2 }
  0x2f   :  { %v77_v23 = vsub.f32 %v74_v19, %v376_v11  ;;  %v79_v31 = vsub.f32 %v75_v20, %v373_v10  ;;  %v76_v33 = vsub.f32 %v72_v22, %v370_v7  ;;  %v53_v45 = vand.u32 2147483647, %v376_v11 }
  0x30   :  { %v84_v36 = vand.u32 2147483647, %v78_v21  ;;  %v88_v37 = vmul.f32 %v78_v21, %v78_v21  ;;  %v57_v46 = vmul.f32 %v376_v11, %v376_v11  ;;  %vm116_vm2 = vcmp.lt.s32.totalorder %v397_v28, 127 }
  0x31   :  { %v83_v38 = vand.u32 2147483647, %v77_v23  ;;  %v87_v39 = vmul.f32 %v77_v23, %v77_v23  ;;  %v85_v43 = vand.u32 2147483647, %v79_v31  ;;  %v82_v48 = vand.u32 2147483647, %v76_v33 }
  0x32   :  { %139 = vrot.lane.b32.xlu1 %v376_v11, %s324_s1  ;;  %137 = vrot.lane.b32.xlu0 %v370_v7, %s324_s1  ;;  %v86_v49 = vmul.f32 %v76_v33, %v76_v33  ;;  %v89_v50 = vmul.f32 %v79_v31, %v79_v31  ;;  %v92_v52 = vadd.f32 %v88_v37, %v84_v36  ;;  %vm149_vm3 = vcmp.lt.s32.totalorder %v397_v28, 126 }
  0x33   :  { %v60_v53 = vadd.f32 %v56_v32, %v52_v30  ;;  %v63_v54 = vadd.f32 %v59_v35, %v55_v34  ;;  %v91_v55 = vadd.f32 %v87_v39, %v83_v38  ;;  %v61_v5 = vadd.f32 %v57_v46, %v53_v45 }
  0x34   :  { %v90_v2 = vadd.f32 %v86_v49, %v82_v48  ;;  %v93_v4 = vadd.f32 %v89_v50, %v85_v43  ;;  %vm182_vm4 = vcmp.lt.s32.totalorder %v397_v28, 125  ;;  %v100_v19 = vadd.f32 %v92_v52, %v62_v40 }
  0x35   :  { %v95_v8 = vsel %vm81_vm1, %v91_v55, 0.0 }
  0x36   :  { %143 = vrot.lane.b32.xlu1 %v373_v10, %s324_s1  ;;  %141 = vrot.lane.b32.xlu0 %v368_v3, %s324_s1  ;;  %v99_v25 = vadd.f32 %v95_v8, %v61_v5  ;;  %v98_v35 = vadd.f32 %v90_v2, %v60_v53 }
  0x3a   :  { %172 = vrot.lane.b32.xlu1 %v376_v11, %s325_s7  ;;  %170 = vrot.lane.b32.xlu0 %v370_v7, %s325_s7 }
  0x3e   :  { %176 = vrot.lane.b32.xlu1 %v373_v10, %s325_s7  ;;  %174 = vrot.lane.b32.xlu0 %v368_v3, %s325_s7 }
  0x9c   :  { %v109_v24 = vpop.permute.xlu1 %108  ;;  %v105_v29 = vpop.permute.xlu0 %104 }
  0x9d   :  { %v112_v41 = vsub.f32 %v105_v29, %v370_v7  ;;  %v114_v56 = vsub.f32 %v109_v24, %v368_v3  ;;  %v97_v24 = vsel %vm81_vm1, %v93_v4, 0.0 }
  0x9e   :  { %v101_v27 = vadd.f32 %v97_v24, %v63_v54 }
  0x9f   :  { %v117_v57 = vand.u32 2147483647, %v112_v41  ;;  %v121_v61 = vmul.f32 %v112_v41, %v112_v41  ;;  %v119_v14 = vand.u32 2147483647, %v114_v56  ;;  %v123_v15 = vmul.f32 %v114_v56, %v114_v56 }
  0xa0   :  { %v111_v42 = vpop.permute.xlu1 %110  ;;  %v107_v47 = vpop.permute.xlu0 %106 }
  0xa1   :  { %v115_v44 = vsub.f32 %v111_v42, %v373_v10  ;;  %v113_v51 = vsub.f32 %v107_v47, %v376_v11  ;;  %v125_v20 = vadd.f32 %v121_v61, %v117_v57  ;;  %v127_v34 = vadd.f32 %v123_v15, %v119_v14 }
  0xa3   :  { %v118_v58 = vand.u32 2147483647, %v113_v51  ;;  %v122_v59 = vmul.f32 %v113_v51, %v113_v51  ;;  %v120_v62 = vand.u32 2147483647, %v115_v44  ;;  %v124_v63 = vmul.f32 %v115_v44, %v115_v44 }
  0xa4   :  { %v140_v60 = vpop.permute.xlu1 %139  ;;  %v138_v1 = vpop.permute.xlu0 %137  ;;  %v129_v39 = vsel %vm116_vm2, %v125_v20, 0.0  ;;  %v131_v51 = vsel %vm116_vm2, %v127_v34, 0.0 }
  0xa5   :  { %v146_v0 = vsub.f32 %v140_v60, %v376_v11  ;;  %v145_v6 = vsub.f32 %v138_v1, %v370_v7  ;;  %v126_v9 = vadd.f32 %v122_v59, %v118_v58  ;;  %v128_v21 = vadd.f32 %v124_v63, %v120_v62 }
  0xa6   :  { %v133_v52 = vadd.f32 %v129_v39, %v98_v35  ;;  %v135_v8 = vadd.f32 %v131_v51, %v100_v19 }
  0xa7   :  { %v151_v12 = vand.u32 2147483647, %v146_v0  ;;  %v155_v13 = vmul.f32 %v146_v0, %v146_v0  ;;  %v150_v16 = vand.u32 2147483647, %v145_v6  ;;  %v154_v17 = vmul.f32 %v145_v6, %v145_v6 }
  0xa8   :  { %v144_v18 = vpop.permute.xlu1 %143  ;;  %v142_v23 = vpop.permute.xlu0 %141  ;;  %v130_v30 = vsel %vm116_vm2, %v126_v9, 0.0  ;;  %v132_v40 = vsel %vm116_vm2, %v128_v21, 0.0 }
  0xa9   :  { %v148_v22 = vsub.f32 %v144_v18, %v373_v10  ;;  %v159_v26 = vadd.f32 %v155_v13, %v151_v12  ;;  %v147_v29 = vsub.f32 %v142_v23, %v368_v3  ;;  %v158_v31 = vadd.f32 %v154_v17, %v150_v16 }
  0xaa   :  { %v134_v43 = vadd.f32 %v130_v30, %v99_v25  ;;  %v136_v55 = vadd.f32 %v132_v40, %v101_v27 }
  0xab   :  { %v153_v32 = vand.u32 2147483647, %v148_v22  ;;  %v157_v33 = vmul.f32 %v148_v22, %v148_v22  ;;  %v152_v36 = vand.u32 2147483647, %v147_v29  ;;  %v156_v37 = vmul.f32 %v147_v29, %v147_v29 }
  0xac   :  { %v173_v38 = vpop.permute.xlu1 %172  ;;  %v171_v42 = vpop.permute.xlu0 %170  ;;  %v163_v44 = vsel %vm149_vm3, %v159_v26, 0.0  ;;  %v162_v47 = vsel %vm149_vm3, %v158_v31, 0.0 }
  0xad   :  { %v179_v41 = vsub.f32 %v173_v38, %v376_v11  ;;  %v161_v45 = vadd.f32 %v157_v33, %v153_v32  ;;  %v178_v46 = vsub.f32 %v171_v42, %v370_v7  ;;  %v160_v48 = vadd.f32 %v156_v37, %v152_v36 }
  0xae   :  { %v167_v56 = vadd.f32 %v163_v44, %v134_v43  ;;  %v166_v7 = vadd.f32 %v162_v47, %v133_v52 }
  0xaf   :  { %v184_v49 = vand.u32 2147483647, %v179_v41  ;;  %v188_v50 = vmul.f32 %v179_v41, %v179_v41  ;;  %v183_v53 = vand.u32 2147483647, %v178_v46  ;;  %v187_v11 = vmul.f32 %v178_v46, %v178_v46 }
  0xb0   :  { %v177_v54 = vpop.permute.xlu1 %176  ;;  %v175_v59 = vpop.permute.xlu0 %174  ;;  %v165_v60 = vsel %vm149_vm3, %v161_v45, 0.0  ;;  %v164_v63 = vsel %vm149_vm3, %v160_v48, 0.0 }
  0xb1   :  { %v192_v57 = vadd.f32 %v188_v50, %v184_v49  ;;  %v181_v58 = vsub.f32 %v177_v54, %v373_v10  ;;  %v191_v61 = vadd.f32 %v187_v11, %v183_v53  ;;  %v180_v62 = vsub.f32 %v175_v59, %v368_v3 }
  0xb2   :  { %v169_v13 = vadd.f32 %v165_v60, %v136_v55  ;;  %v168_v3 = vadd.f32 %v164_v63, %v135_v8 }
  0xb3   :  { %v196_v0 = vsel %vm182_vm4, %v192_v57, 0.0  ;;  %v186_v1 = vand.u32 2147483647, %v181_v58  ;;  %v190_v2 = vmul.f32 %v181_v58, %v181_v58  ;;  %v195_v10 = vsel %vm182_vm4, %v191_v61, 0.0 }
  0xb4   :  { %v200_v4 = vadd.f32 %v196_v0, %v167_v56  ;;  %v185_v5 = vand.u32 2147483647, %v180_v62  ;;  %v189_v6 = vmul.f32 %v180_v62, %v180_v62  ;;  %v199_v9 = vadd.f32 %v195_v10, %v166_v7 }
  0xb5   :  { %v194_v12 = vadd.f32 %v190_v2, %v186_v1 }
  0xb6   :  { %v193_v14 = vadd.f32 %v189_v6, %v185_v5  ;;  %v203_v15 = vadd.f32 %v200_v4, %v199_v9 }
  0xb7   :  { %v198_v16 = vsel %vm182_vm4, %v194_v12, 0.0 }
  0xb8   :  { %v202_v17 = vadd.f32 %v198_v16, %v169_v13  ;;  %v197_v18 = vsel %vm182_vm4, %v193_v14, 0.0  ;;  %v204_v20 = vrot.slane %v203_v15, 4 }
  0xb9   :  { %v201_v21 = vadd.f32 %v197_v18, %v168_v3 }
  0xba   :  { %v205_v22 = vadd.f32 %v204_v20, %v203_v15 }
  0xbb   :  { %v210_v23 = vadd.f32 %v202_v17, %v201_v21 }
  0xbc   :  { %v206_v24 = vrot.slane %v205_v22, 2 }
  0xbd   :  { %v211_v25 = vrot.slane %v210_v23, 4 }
  0xbe   :  { %v207_v26 = vadd.f32 %v206_v24, %v205_v22 }
  0xbf   :  { %v212_v19 = vadd.f32 %v211_v25, %v210_v23 }
  0xc0   :  { %v208_v30 = vrot.slane %v207_v26, 1 }
  0xc1   :  { %v213_v29 = vrot.slane %v212_v19, 2 }
  0xc2   :  { %v209_v31 = vadd.f32 %v208_v30, %v207_v26 }
  0xc3   :  { %v214_v32 = vadd.f32 %v213_v29, %v212_v19 }
  0xc4   :  { %217 = vst [vmem:[#allocation7] sm:$0x1] %v209_v31 }
  0xc5   :  { %v215_v33 = vrot.slane %v214_v32, 1 }
  0xc7   :  { %v216_v34 = vadd.f32 %v215_v33, %v214_v32 }
  0xc9   :  { %218 = vst [vmem:[#allocation7 + $0x1] sm:$0x1] %v216_v34 }
  0xca   :  { %302 = shalt.err (!%p299_p6)
}
  0xcb   :  { %s303_s13 = scalar_lea.hbm %s465_s2, 32 }
  0xcc   :  { %p304_p7 = scmp.ne.s32.totalorder %s465_s2, %s303_s13  ;;  %p307_p8 = scmp.lt.u32.totalorder %s303_s13, %s465_s2 }
  0xce   :  { %p309_p9 = pnand %p307_p8, %p304_p7 }
  0xd0   :  { %312 = shalt.err (!%p309_p9)
}
  0xd1   :  { %s327_s18 = smov 16   ;;  %s328_s19 = smov 1  }
  0xd2   :  { %230 = dma.vmem_to_hbm [thread:$0]  %s225_s9, 32, %s465_s2, [#allocation4], %s327_s18, %s327_s18, %s328_s19  }
  0xd3   :  { %317 = dma.done.wait [#allocation4], 32  }
  0xd4   :  { %318 = vsyncadd [#allocation4], 4294967264 }
  0xd5   :  { %234 = vsyncpa [#allocation3], 1 }
  0xd6   :  { %235 = vsyncpa [#allocation6], 1 }
  0xd7   :  { %236 = vsyncpa [#allocation4], 1 }

</bundles_post_ra>
